<compile_context>
chip_gen: v7x
topology: tpu7x:2x2x1
jax: 0.10.0
libtpu: 0.0.40
codegen_flags: <defaults>
</compile_context>

<pallas_src>
import jax
import jax.numpy as jnp
from jax import lax
from jax.experimental import pallas as pl
from jax.experimental.pallas import tpu as pltpu

EMB_DIM = 300
HID = 150
EP = 384   # padded pooled/embedding width (300 -> 384)
HP = 256   # padded hidden width          (150 -> 256)
OP = 128   # padded output width          (  1 -> 128)


def _round_up(x, m):
    return (x + m - 1) // m * m


def baseline_forward(token_ids, emb_table, w1, b1, w2, b2, w3, b3):
    """token_ids: [B, T] int32; weights wN are PyTorch-style [out, in]."""
    B, T = token_ids.shape
    V, E = emb_table.shape
    assert E == EMB_DIM

    VP = _round_up(V, 8)

    # --- batch blocking: aim for >= 4 grid steps on big batches, cap for VMEM ---
    BB = min(512, max(8, _round_up(-(-B // 4), 8)))
    Bp = _round_up(B, BB)

    # --- token ids -> flat SMEM prefetch array (pad rows with id 0; rows >= B are
    #     computed but discarded by the wrapper slice) ---
    tok = token_ids.astype(jnp.int32)
    if Bp != B:
        tok = jnp.pad(tok, ((0, Bp - B), (0, 0)))
    tok_flat = tok.reshape(-1)                                        # [Bp*T] int32

    # --- padded, packed parameters ---
    def pad2(a, rows, cols):
        return jnp.pad(a, ((0, rows - a.shape[0]), (0, cols - a.shape[1])))

    emb_p = pad2(emb_table.astype(jnp.float32), VP, EP)               # [VP, EP] f32
    w1_p = pad2(w1.T.astype(jnp.bfloat16), EP, HP)                    # [300,150] -> [384,256]
    w2_p = pad2(w2.T.astype(jnp.bfloat16), HP, HP)                    # [150,150] -> [256,256]
    w3_p = pad2(w3.T.astype(jnp.bfloat16), HP, HP)                    # [150,  1] -> [256,256]
    packed_w = jnp.concatenate([w1_p, w2_p, w3_p], axis=0)            # [896, 256] bf16

    def padb(b):
        b = b.astype(jnp.float32).reshape(1, -1)
        return jnp.pad(b, ((0, 0), (0, HP - b.shape[1])))
    biases = jnp.concatenate([padb(b1), padb(b2), padb(b3)], axis=0)  # [3, HP] f32

    inv_t = 1.0 / T

    def baseline_kernel(tok_ref, emb_ref, w_ref, b_ref, o_ref, pooled_ref):
        i = pl.program_id(0)
        base = i * BB

        # --- fused embedding gather + mean pool into VMEM scratch ---
        def gather_one(b, carry):
            row = base + b
            acc = jnp.zeros((1, EP), jnp.float32)
            for t in range(T):                      # T is small & static -> unrolled
                tok_id = tok_ref[row * T + t]
                acc = acc + emb_ref[pl.ds(tok_id, 1), :]
            pooled_ref[pl.ds(b, 1), :] = acc * inv_t
            return carry

        lax.fori_loop(0, BB, gather_one, 0)

        # --- 3-layer MLP on the MXU (bf16 operands, f32 accumulation) ---
        pooled = pooled_ref[...].astype(jnp.bfloat16)                 # [BB, 384]
        w1k = w_ref[0:EP, :]                                          # [384, 256]
        w2k = w_ref[EP:EP + HP, :]                                    # [256, 256]
        w3k = w_ref[EP + HP:EP + 2 * HP, 0:OP]                        # [256, 128]

        h1 = jnp.maximum(
            jnp.dot(pooled, w1k, preferred_element_type=jnp.float32) + b_ref[0:1, :], 0.0)
        h2 = jnp.maximum(
            jnp.dot(h1.astype(jnp.bfloat16), w2k,
                    preferred_element_type=jnp.float32) + b_ref[1:2, :], 0.0)
        o_ref[...] = (jnp.dot(h2.astype(jnp.bfloat16), w3k,
                              preferred_element_type=jnp.float32) + b_ref[2:3, 0:OP])

    # --- VMEM budget (resident table + weights double-buffered, outputs, scratch) ---
    need = (2 * VP * EP * 4            # emb table (f32), 2 pipeline buffers
            + 2 * (EP + 2 * HP) * HP * 2   # packed MLP weights (bf16)
            + 2 * 3 * HP * 4               # biases
            + 2 * BB * OP * 4              # output blocks
            + BB * EP * 4)                 # pooled scratch
    vmem_limit = int(min(100 << 20, max(32 << 20, 2 * need + (8 << 20))))

    grid = (Bp // BB,)
    out = pl.pallas_call(
        baseline_kernel,
        out_shape=jax.ShapeDtypeStruct((Bp, OP), jnp.float32),
        grid_spec=pltpu.PrefetchScalarGridSpec(
            num_scalar_prefetch=1,
            grid=grid,
            in_specs=[
                pl.BlockSpec((VP, EP), lambda i, tok: (0, 0)),                 # emb table (resident)
                pl.BlockSpec((EP + 2 * HP, HP), lambda i, tok: (0, 0)),        # packed MLP weights
                pl.BlockSpec((3, HP), lambda i, tok: (0, 0)),                  # biases
            ],
            out_specs=pl.BlockSpec((BB, OP), lambda i, tok: (i, 0)),
            scratch_shapes=[pltpu.VMEM((BB, EP), jnp.float32)],
        ),
        compiler_params=pltpu.CompilerParams(
            dimension_semantics=("parallel",),
            vmem_limit_bytes=vmem_limit,
        ),
    )(tok_flat, emb_p, packed_w, biases)

    return out[:B, 0]  # matches x.reshape(-1) in the PyTorch module


if __name__ == "__main__":
    key = jax.random.PRNGKey(0)
    k_emb, k_w1, k_b1, k_w2, k_b2, k_w3, k_b3, k_x = jax.random.split(key, 8)

    VOCAB = 50
    B, T = 8, 8

    # Deterministic synthetic parameters (shapes from the module __init__).
    emb_table = jax.random.normal(k_emb, (VOCAB, EMB_DIM), dtype=jnp.float32) * 0.1
    w1 = jax.random.normal(k_w1, (HID, EMB_DIM), dtype=jnp.float32) * 0.05   # l1: 300 -> 150
    b1 = jax.random.normal(k_b1, (HID,), dtype=jnp.float32) * 0.05
    w2 = jax.random.normal(k_w2, (HID, HID), dtype=jnp.float32) * 0.05       # l2: 150 -> 150
    b2 = jax.random.normal(k_b2, (HID,), dtype=jnp.float32) * 0.05
    w3 = jax.random.normal(k_w3, (1, HID), dtype=jnp.float32) * 0.05         # l3: 150 -> 1
    b3 = jax.random.normal(k_b3, (1,), dtype=jnp.float32) * 0.05

    token_ids = jax.random.randint(k_x, (B, T), 0, VOCAB, dtype=jnp.int32)

    out = baseline_forward(token_ids, emb_table, w1, b1, w2, b2, w3, b3)
    out = jax.block_until_ready(out)

    # Pure-JAX f32 reference (same semantics as the PyTorch forward).
    emb = jnp.take(emb_table, token_ids, axis=0)
    pooled = jnp.mean(emb, axis=1)
    h1 = jnp.maximum(pooled @ w1.T + b1, 0.0)
    h2 = jnp.maximum(h1 @ w2.T + b2, 0.0)
    ref = (h2 @ w3.T + b3).reshape(-1)

    assert out.shape == (B,), out.shape
    # bf16 MXU operands (f32 accumulation) => loosen tolerance vs. the pure-f32 ref.
    assert jnp.allclose(out, ref, atol=2e-2, rtol=2e-2), (out, ref)

    print("KERNEL_OK")
</pallas_src>

<mosaic_0001>
module attributes {stable_mosaic.version = 11 : i64} {
  func.func @baseline_kernel(%arg0: i32, %arg1: memref<64xi32, #tpu.memory_space<smem>>, %arg2: memref<56x384xf32, #tpu.memory_space<vmem>>, %arg3: memref<896x256xbf16, #tpu.memory_space<vmem>>, %arg4: memref<3x256xf32, #tpu.memory_space<vmem>>, %arg5: memref<8x128xf32, #tpu.memory_space<vmem>>, %arg6: memref<8x384xf32, #tpu.memory_space<vmem>>) attributes {dimension_semantics = [#tpu.dimension_semantics<parallel>], iteration_bounds = array<i64: 1>, scalar_prefetch = 1 : i64, scratch_operands = 1 : i64, tpu.core_type = #tpu.core_type<tc>, window_params = [{pipeline_mode = #tpu.pipeline_mode<synchronous>, transform_indices = @transform_0, window_bounds = array<i64: 56, 384>}, {pipeline_mode = #tpu.pipeline_mode<synchronous>, transform_indices = @transform_1, window_bounds = array<i64: 896, 256>}, {pipeline_mode = #tpu.pipeline_mode<synchronous>, transform_indices = @transform_2, window_bounds = array<i64: 3, 256>}, {transform_indices = @transform_3, window_bounds = array<i64: 8, 128>}]} {
    %c8_i32 = arith.constant 8 : i32
    %0 = arith.muli %arg0, %c8_i32 : i32
    %c0_i32 = arith.constant 0 : i32
    %c8_i32_0 = arith.constant 8 : i32
    %1 = arith.addi %c0_i32, %c8_i32_0 : i32
    %c1_i32 = arith.constant 1 : i32
    scf.for %arg7 = %c0_i32 to %1 step %c1_i32  : i32 {
      %26 = arith.addi %0, %arg7 : i32
      %cst_17 = arith.constant 0.000000e+00 : f32
      %27 = vector.broadcast %cst_17 : f32 to vector<1x384xf32>
      %c8_i32_18 = arith.constant 8 : i32
      %28 = arith.muli %26, %c8_i32_18 : i32
      %c0_i32_19 = arith.constant 0 : i32
      %29 = arith.addi %28, %c0_i32_19 : i32
      %30 = arith.index_cast %29 : i32 to index
      %31 = memref.load %arg1[%30] : memref<64xi32, #tpu.memory_space<smem>>
      %32 = arith.index_cast %31 : i32 to index
      %c0_20 = arith.constant 0 : index
      %33 = vector.load %arg2[%32, %c0_20] : memref<56x384xf32, #tpu.memory_space<vmem>>, vector<1x384xf32>
      %34 = arith.addf %27, %33 : vector<1x384xf32>
      %c8_i32_21 = arith.constant 8 : i32
      %35 = arith.muli %26, %c8_i32_21 : i32
      %c1_i32_22 = arith.constant 1 : i32
      %36 = arith.addi %35, %c1_i32_22 : i32
      %37 = arith.index_cast %36 : i32 to index
      %38 = memref.load %arg1[%37] : memref<64xi32, #tpu.memory_space<smem>>
      %39 = arith.index_cast %38 : i32 to index
      %c0_23 = arith.constant 0 : index
      %40 = vector.load %arg2[%39, %c0_23] : memref<56x384xf32, #tpu.memory_space<vmem>>, vector<1x384xf32>
      %41 = arith.addf %34, %40 : vector<1x384xf32>
      %c8_i32_24 = arith.constant 8 : i32
      %42 = arith.muli %26, %c8_i32_24 : i32
      %c2_i32 = arith.constant 2 : i32
      %43 = arith.addi %42, %c2_i32 : i32
      %44 = arith.index_cast %43 : i32 to index
      %45 = memref.load %arg1[%44] : memref<64xi32, #tpu.memory_space<smem>>
      %46 = arith.index_cast %45 : i32 to index
      %c0_25 = arith.constant 0 : index
      %47 = vector.load %arg2[%46, %c0_25] : memref<56x384xf32, #tpu.memory_space<vmem>>, vector<1x384xf32>
      %48 = arith.addf %41, %47 : vector<1x384xf32>
      %c8_i32_26 = arith.constant 8 : i32
      %49 = arith.muli %26, %c8_i32_26 : i32
      %c3_i32 = arith.constant 3 : i32
      %50 = arith.addi %49, %c3_i32 : i32
      %51 = arith.index_cast %50 : i32 to index
      %52 = memref.load %arg1[%51] : memref<64xi32, #tpu.memory_space<smem>>
      %53 = arith.index_cast %52 : i32 to index
      %c0_27 = arith.constant 0 : index
      %54 = vector.load %arg2[%53, %c0_27] : memref<56x384xf32, #tpu.memory_space<vmem>>, vector<1x384xf32>
      %55 = arith.addf %48, %54 : vector<1x384xf32>
      %c8_i32_28 = arith.constant 8 : i32
      %56 = arith.muli %26, %c8_i32_28 : i32
      %c4_i32 = arith.constant 4 : i32
      %57 = arith.addi %56, %c4_i32 : i32
      %58 = arith.index_cast %57 : i32 to index
      %59 = memref.load %arg1[%58] : memref<64xi32, #tpu.memory_space<smem>>
      %60 = arith.index_cast %59 : i32 to index
      %c0_29 = arith.constant 0 : index
      %61 = vector.load %arg2[%60, %c0_29] : memref<56x384xf32, #tpu.memory_space<vmem>>, vector<1x384xf32>
      %62 = arith.addf %55, %61 : vector<1x384xf32>
      %c8_i32_30 = arith.constant 8 : i32
      %63 = arith.muli %26, %c8_i32_30 : i32
      %c5_i32 = arith.constant 5 : i32
      %64 = arith.addi %63, %c5_i32 : i32
      %65 = arith.index_cast %64 : i32 to index
      %66 = memref.load %arg1[%65] : memref<64xi32, #tpu.memory_space<smem>>
      %67 = arith.index_cast %66 : i32 to index
      %c0_31 = arith.constant 0 : index
      %68 = vector.load %arg2[%67, %c0_31] : memref<56x384xf32, #tpu.memory_space<vmem>>, vector<1x384xf32>
      %69 = arith.addf %62, %68 : vector<1x384xf32>
      %c8_i32_32 = arith.constant 8 : i32
      %70 = arith.muli %26, %c8_i32_32 : i32
      %c6_i32 = arith.constant 6 : i32
      %71 = arith.addi %70, %c6_i32 : i32
      %72 = arith.index_cast %71 : i32 to index
      %73 = memref.load %arg1[%72] : memref<64xi32, #tpu.memory_space<smem>>
      %74 = arith.index_cast %73 : i32 to index
      %c0_33 = arith.constant 0 : index
      %75 = vector.load %arg2[%74, %c0_33] : memref<56x384xf32, #tpu.memory_space<vmem>>, vector<1x384xf32>
      %76 = arith.addf %69, %75 : vector<1x384xf32>
      %c8_i32_34 = arith.constant 8 : i32
      %77 = arith.muli %26, %c8_i32_34 : i32
      %c7_i32 = arith.constant 7 : i32
      %78 = arith.addi %77, %c7_i32 : i32
      %79 = arith.index_cast %78 : i32 to index
      %80 = memref.load %arg1[%79] : memref<64xi32, #tpu.memory_space<smem>>
      %81 = arith.index_cast %80 : i32 to index
      %c0_35 = arith.constant 0 : index
      %82 = vector.load %arg2[%81, %c0_35] : memref<56x384xf32, #tpu.memory_space<vmem>>, vector<1x384xf32>
      %83 = arith.addf %76, %82 : vector<1x384xf32>
      %cst_36 = arith.constant 1.250000e-01 : f32
      %84 = vector.broadcast %cst_36 : f32 to vector<1x384xf32>
      %85 = arith.mulf %83, %84 : vector<1x384xf32>
      %86 = arith.index_cast %arg7 : i32 to index
      %c0_37 = arith.constant 0 : index
      %87 = vector.load %arg6[%86, %c0_37] : memref<8x384xf32, #tpu.memory_space<vmem>>, vector<1x384xf32>
      tpu.vector_store %arg6[%86, %c0_37], %85 {strides = array<i32>} : memref<8x384xf32, #tpu.memory_space<vmem>>, vector<1x384xf32>,
    }
    %c8_i32_1 = arith.constant 8 : i32
    %c0 = arith.constant 0 : index
    %c0_2 = arith.constant 0 : index
    %2 = vector.load %arg6[%c0, %c0_2] : memref<8x384xf32, #tpu.memory_space<vmem>>, vector<8x384xf32>
    %3 = arith.truncf %2 : vector<8x384xf32> to vector<8x384xbf16>
    %c0_3 = arith.constant 0 : index
    %c0_4 = arith.constant 0 : index
    %4 = vector.load %arg3[%c0_3, %c0_4] : memref<896x256xbf16, #tpu.memory_space<vmem>>, vector<384x256xbf16>
    %c384 = arith.constant 384 : index
    %c0_5 = arith.constant 0 : index
    %5 = vector.load %arg3[%c384, %c0_5] : memref<896x256xbf16, #tpu.memory_space<vmem>>, vector<256x256xbf16>
    %c640 = arith.constant 640 : index
    %c0_6 = arith.constant 0 : index
    %6 = vector.load %arg3[%c640, %c0_6] : memref<896x256xbf16, #tpu.memory_space<vmem>>, vector<256x128xbf16>
    %cst = arith.constant dense<0.000000e+00> : vector<8x256xf32>
    %7 = tpu.matmul %3, %4, %cst {dimension_numbers = #tpu.dot_dimension_numbers<[1], [0], [0], [1], [0, 0, 1, 1], [], []>} : vector<8x384xbf16>, vector<384x256xbf16>, vector<8x256xf32> -> vector<8x256xf32>
    %c0_7 = arith.constant 0 : index
    %c0_8 = arith.constant 0 : index
    %8 = vector.load %arg4[%c0_7, %c0_8] : memref<3x256xf32, #tpu.memory_space<vmem>>, vector<1x256xf32>
    %9 = vector.broadcast %8 : vector<1x256xf32> to vector<8x256xf32>
    %10 = arith.addf %7, %9 : vector<8x256xf32>
    %cst_9 = arith.constant 0.000000e+00 : f32
    %11 = vector.broadcast %cst_9 : f32 to vector<8x256xf32>
    %12 = arith.maximumf %10, %11 : vector<8x256xf32>
    %13 = arith.truncf %12 : vector<8x256xf32> to vector<8x256xbf16>
    %cst_10 = arith.constant dense<0.000000e+00> : vector<8x256xf32>
    %14 = tpu.matmul %13, %5, %cst_10 {dimension_numbers = #tpu.dot_dimension_numbers<[1], [0], [0], [1], [0, 0, 1, 1], [], []>} : vector<8x256xbf16>, vector<256x256xbf16>, vector<8x256xf32> -> vector<8x256xf32>
    %c1 = arith.constant 1 : index
    %c0_11 = arith.constant 0 : index
    %15 = vector.load %arg4[%c1, %c0_11] : memref<3x256xf32, #tpu.memory_space<vmem>>, vector<1x256xf32>
    %16 = vector.broadcast %15 : vector<1x256xf32> to vector<8x256xf32>
    %17 = arith.addf %14, %16 : vector<8x256xf32>
    %cst_12 = arith.constant 0.000000e+00 : f32
    %18 = vector.broadcast %cst_12 : f32 to vector<8x256xf32>
    %19 = arith.maximumf %17, %18 : vector<8x256xf32>
    %20 = arith.truncf %19 : vector<8x256xf32> to vector<8x256xbf16>
    %cst_13 = arith.constant dense<0.000000e+00> : vector<8x128xf32>
    %21 = tpu.matmul %20, %6, %cst_13 {dimension_numbers = #tpu.dot_dimension_numbers<[1], [0], [0], [1], [0, 0, 1, 1], [], []>} : vector<8x256xbf16>, vector<256x128xbf16>, vector<8x128xf32> -> vector<8x128xf32>
    %c2 = arith.constant 2 : index
    %c0_14 = arith.constant 0 : index
    %22 = vector.load %arg4[%c2, %c0_14] : memref<3x256xf32, #tpu.memory_space<vmem>>, vector<1x128xf32>
    %23 = vector.broadcast %22 : vector<1x128xf32> to vector<8x128xf32>
    %24 = arith.addf %21, %23 : vector<8x128xf32>
    %c0_15 = arith.constant 0 : index
    %c0_16 = arith.constant 0 : index
    %25 = vector.load %arg5[%c0_15, %c0_16] : memref<8x128xf32, #tpu.memory_space<vmem>>, vector<8x128xf32>
    tpu.vector_store %arg5[%c0_15, %c0_16], %24 {strides = array<i32>} : memref<8x128xf32, #tpu.memory_space<vmem>>, vector<8x128xf32>,
    return
  }
  func.func @transform_0(%arg0: i32, %arg1: memref<64xi32, #tpu.memory_space<smem>>) -> (i32, i32) {
    %c0_i32 = arith.constant 0 : i32
    %c0_i32_0 = arith.constant 0 : i32
    %c0_i32_1 = arith.constant 0 : i32
    return %c0_i32, %c0_i32_0 : i32, i32
  }
  func.func @transform_1(%arg0: i32, %arg1: memref<64xi32, #tpu.memory_space<smem>>) -> (i32, i32) {
    %c0_i32 = arith.constant 0 : i32
    %c0_i32_0 = arith.constant 0 : i32
    %c0_i32_1 = arith.constant 0 : i32
    return %c0_i32, %c0_i32_0 : i32, i32
  }
  func.func @transform_2(%arg0: i32, %arg1: memref<64xi32, #tpu.memory_space<smem>>) -> (i32, i32) {
    %c0_i32 = arith.constant 0 : i32
    %c0_i32_0 = arith.constant 0 : i32
    %c0_i32_1 = arith.constant 0 : i32
    return %c0_i32, %c0_i32_0 : i32, i32
  }
  func.func @transform_3(%arg0: i32, %arg1: memref<64xi32, #tpu.memory_space<smem>>) -> (i32, i32) {
    %c0_i32 = arith.constant 0 : i32
    %c0_i32_0 = arith.constant 0 : i32
    return %arg0, %c0_i32 : i32, i32
  }
}

</mosaic_0001>

<bundles_post_ra>
// kernel: tpu_custom_call.1
= control target key start
LH: loop header
LB: loop body
LE: loop exit
PB: predicated region body
PF: predicated region fallthrough
CT: control target
= control target key end

     0   :  { %s1537_s0 = inlined_call_operand.hbm [shape: s32[64], index: 0, kind: input, shape index: {}]   ;;  %s1538_s1 = inlined_call_operand.hbm [shape: f32[56,384], index: 1, kind: input, shape index: {}]   ;;  %s1539_s2 = inlined_call_operand.hbm [shape: bf16[896,256], index: 2, kind: input, shape index: {}]   ;;  %s1540_s3 = inlined_call_operand.vmem [shape: f32[3,256], index: 3, kind: input, shape index: {}]   ;;  %s1541_s4 = inlined_call_operand.hbm [shape: f32[8,128], index: 4, kind: output, shape index: {}]  }
   0x1   :  { %s1321_s17 = scalar_lea.hbm %s1537_s0, 16 }
   0x2   :  { %p1322_p0 = scmp.ne.s32.totalorder %s1537_s0, %s1321_s17  ;;  %p1325_p1 = scmp.lt.u32.totalorder %s1321_s17, %s1537_s0 }
   0x4   :  { %p1327_p2 = pnand %p1325_p1, %p1322_p0 }
   0x6   :  { %1330 = shalt.err (!%p1327_p2)  }
   0x7   :  { %s1413_s22 = smov [#allocation4]  }
   0x8   :  { %10 = dma.hbm_to_smem %s1537_s0, 16, %s1413_s22, [#allocation3] }
   0x9   :  { %1401 = dma.done.wait [#allocation3], 16 }
   0xa   :  { %1402 = vsyncadd [#allocation3], 4294967280 }
   0xb   :  { %12 = sfence }
   0xc   :  { %13 = vsyncpa [#allocation6], 0 }
   0xd   :  { %14 = vsyncpa [#allocation9], 0 }
   0xe   :  { %15 = vsyncpa [#allocation7], 0  ;;  %s1414_s25 = smov [#allocation5]   ;;  %s1331_s29 = scalar_lea.hbm %s1538_s1, 2688 }
   0xf   :  { %s21_s26 = sshll.u32 %s1414_s25, 4  ;;  %p1332_p3 = scmp.ne.s32.totalorder %s1538_s1, %s1331_s29  ;;  %s22_s26 = int_to_ptr.vmem [resolvable:$true] %s21_s26 }
  0x10   :  { %p1335_p4 = scmp.lt.u32.totalorder %s1331_s29, %s1538_s1 }
  0x12   :  { %p1337_p5 = pnand %p1335_p4, %p1332_p3 }
  0x14   :  { %1340 = shalt.err (!%p1337_p5)
}
  0x15   :  { %s1341_s0 = scalar_lea.vmem %s22_s26, 2688  ;;  %p1346_p7 = scmp.lt.s32.totalorder %s22_s26, %s22_s26 }
  0x16   :  { %p1342_p6 = scmp.ne.s32.totalorder %s22_s26, %s1341_s0  ;;  %p1347_p8 = scmp.lt.s32.totalorder %s1341_s0, %s1341_s0 }
  0x18   :  { %p1348_p9 = por %p1347_p8, %p1346_p7 }
  0x1a   :  { %p1349_p10 = pnand %p1348_p9, %p1342_p6 }
  0x1c   :  { %1352 = shalt.err (!%p1349_p10)
}
  0x1d   :  { %s1415_s8 = smov 384   ;;  %s1416_s9 = smov 24  }
  0x1e   :  { %27 = dma.hbm_to_vmem [thread:$0]  %s1538_s1, 2688, %s22_s26, [#allocation6], %s1415_s8, %s1415_s8, %s1416_s9  }
  0x1f   :  { %s1417_s12 = smov [#allocation8]   ;;  %s1353_s16 = scalar_lea.hbm %s1539_s2, 14336 }
  0x20   :  { %s33_s13 = sshll.u32 %s1417_s12, 4  ;;  %p1354_p11 = scmp.ne.s32.totalorder %s1539_s2, %s1353_s16  ;;  %s34_s13 = int_to_ptr.vmem [resolvable:$true] %s33_s13 }
  0x21   :  { %p1357_p12 = scmp.lt.u32.totalorder %s1353_s16, %s1539_s2 }
  0x23   :  { %p1359_p13 = pnand %p1357_p12, %p1354_p11 }
  0x25   :  { %1362 = shalt.err (!%p1359_p13)
}
  0x26   :  { %s1363_s21 = scalar_lea.vmem %s34_s13, 14336  ;;  %p1368_p1 = scmp.lt.s32.totalorder %s34_s13, %s34_s13 }
  0x27   :  { %p1364_p0 = scmp.ne.s32.totalorder %s34_s13, %s1363_s21  ;;  %p1369_p2 = scmp.lt.s32.totalorder %s1363_s21, %s1363_s21 }
  0x29   :  { %p1370_p3 = por %p1369_p2, %p1368_p1 }
  0x2b   :  { %p1371_p4 = pnand %p1370_p3, %p1364_p0 }
  0x2d   :  { %1374 = shalt.err (!%p1371_p4)
}
  0x2e   :  { %s1418_s1 = smov 128   ;;  %s1419_s22 = smov 8  }
  0x2f   :  { %39 = dma.hbm_to_vmem [thread:$0]  %s1539_s2, 14336, %s34_s13, [#allocation9], %s1418_s1, %s1418_s1, %s1419_s22  }
  0x30   :  { %1403 = dma.done.wait [#allocation6], 2688  }
  0x31   :  { %1404 = vsyncadd [#allocation6], 4294964608 }
  0x32   :  { %1405 = dma.done.wait [#allocation9], 14336  }
  0x33   :  { %1406 = vsyncadd [#allocation9], 4294952960  ;;  %s1483_s25 = smov 0  }
  0x34 LB: > { %s1489_s26 = sshll.u32 %s1411_s25, 3  ;;  %v154_v13 = vlaneseq  ;;  %s1411_s25 = sphi %s1483_s25, %s55_s25  }
  0x35   : > { %s58_s2 = sld [smem:[#allocation4 + %s1489_s26]]  ;;  %s69_s27 = sadd.s32 1, %s1489_s26 }
  0x36   : > { %s70_s28 = sld [smem:[#allocation4 + %s69_s27]]  ;;  %s81_s29 = sadd.s32 2, %s1489_s26  ;;  %vm156_vm0 = vcmp.lt.s32.totalorder %v154_v13, 384 }
  0x37   : > { %s82_s30 = sld [smem:[#allocation4 + %s81_s29]]  ;;  %s93_s5 = sadd.s32 3, %s1489_s26 }
  0x38   : > { %s94_s6 = sld [smem:[#allocation4 + %s93_s5]]  ;;  %s105_s7 = sadd.s32 4, %s1489_s26 }
  0x39   : > { %s1496_s0 = sld [smem:[#allocation4 + %s105_s7]]  ;;  %s117_s8 = sadd.s32 5, %s1489_s26 }
  0x3a   : > { %s1499_s9 = sld [smem:[#allocation4 + %s117_s8]]  ;;  %s129_s10 = sadd.s32 6, %s1489_s26 }
  0x3b   : > { %s59_s11 = sshra.s32 %s58_s2, 3  ;;  %s62_s12 = sand.u32 7, %s58_s2 }
  0x3c   : > { %s1033_s13 = smul.u32 24, %s59_s11  ;;  %s71_s14 = sshra.s32 %s70_s28, 3 }
  0x3d   : > { %s74_s15 = sand.u32 7, %s70_s28  ;;  %s1034_s16 = smul.u32 24, %s71_s14 }
  0x3e   : > { %s65_s17 = sadd.s32 %s1033_s13, %s62_s12  ;;  %s83_s18 = sshra.s32 %s82_s30, 3 }
  0x3f   : > { %s77_s19 = sadd.s32 %s1034_s16, %s74_s15  ;;  %s66_s20 = scalar_lea.vmem [#allocation5], %s65_s17 }
  0x40   : > { %v67_v0 = vld [vmem:[%s66_s20] ss:$8 sm:$0x7]  ;;  %s86_s21 = sand.u32 7, %s82_s30  ;;  %s78_s1 = scalar_lea.vmem [#allocation5], %s77_s19 }
  0x41   : > { %v79_v1 = vld [vmem:[%s78_s1] ss:$8 sm:$0x7]  ;;  %s1035_s22 = smul.u32 24, %s83_s18  ;;  %s95_s23 = sshra.s32 %s94_s6, 3 }
  0x42   : > { %v80_v2 = vadd.f32 %v79_v1, %v67_v0  ;;  %s98_s24 = sand.u32 7, %s94_s6  ;;  %s1036_s2 = smul.u32 24, %s95_s23 }
  0x43   : > { %s89_s27 = sadd.s32 %s1035_s22, %s86_s21  ;;  %s107_s28 = sshra.s32 %s1496_s0, 3 }
  0x44   : > { %s101_s29 = sadd.s32 %s1036_s2, %s98_s24  ;;  %s90_s5 = scalar_lea.vmem [#allocation5], %s89_s27 }
  0x45   : > { %v91_v3 = vld [vmem:[%s90_s5] ss:$8 sm:$0x7]  ;;  %s110_s7 = sand.u32 7, %s1496_s0  ;;  %s102_s8 = scalar_lea.vmem [#allocation5], %s101_s29 }
  0x46   : > { %v92_v4 = vadd.f32 %v91_v3, %v80_v2  ;;  %v103_v5 = vld [vmem:[%s102_s8] ss:$8 sm:$0x7]  ;;  %s1037_s30 = smul.u32 24, %s107_s28  ;;  %s119_s11 = sshra.s32 %s1499_s9, 3 }
  0x47   : > { %s122_s12 = sand.u32 7, %s1499_s9  ;;  %s1038_s13 = smul.u32 24, %s119_s11 }
  0x48   : > { %v104_v6 = vadd.f32 %v103_v5, %v92_v4  ;;  %s113_s14 = sadd.s32 %s1037_s30, %s110_s7  ;;  %s130_s6 = sld [smem:[#allocation4 + %s129_s10]] }
  0x49   : > { %s125_s15 = sadd.s32 %s1038_s13, %s122_s12  ;;  %s114_s16 = scalar_lea.vmem [#allocation5], %s113_s14 }
  0x4a   : > { %v115_v7 = vld [vmem:[%s114_s16] ss:$8 sm:$0x7]  ;;  %s141_s17 = sadd.s32 7, %s1489_s26  ;;  %s126_s0 = scalar_lea.vmem [#allocation5], %s125_s15 }
  0x4b   : > { %s142_s18 = sld [smem:[#allocation4 + %s141_s17]]  ;;  %v116_v8 = vadd.f32 %v115_v7, %v104_v6  ;;  %v127_v9 = vld [vmem:[%s126_s0] ss:$8 sm:$0x7]  ;;  %s158_s19 = sshra.s32 %s1411_s25, 3 }
  0x4c   : > { %s1041_s9 = smul.u32 24, %s158_s19  ;;  %s161_s27 = sand.u32 7, %s1411_s25 }
  0x4d   : > { %v128_v10 = vadd.f32 %v127_v9, %v116_v8  ;;  %s55_s25 = sadd.s32 1, %s1411_s25  }
  0x4e   : > { %s131_s20 = sshra.s32 %s130_s6, 3  ;;  %s134_s21 = sand.u32 7, %s130_s6 }
  0x4f   : > { %s1039_s1 = smul.u32 24, %s131_s20  ;;  %s164_s28 = sadd.s32 %s1041_s9, %s161_s27 }
  0x50   : > { %s165_s5 = scalar_lea.vmem [#allocation2], %s164_s28  ;;  %p52_p5 = scmp.ge.s32.totalorder %s55_s25, 8  }
  0x51   : > { %s137_s22 = sadd.s32 %s1039_s1, %s134_s21  ;;  %s143_s23 = sshra.s32 %s142_s18, 3  ;;  %v1185_v17 = vld [vmem:[#allocation8 + $0x4] ss:$8 sps:$4 sm:$0xff] (%p52_p5)   ;;  %v1187_v18 = vld [vmem:[#allocation8] ss:$8 sps:$4 sm:$0xff] (%p52_p5)  }
  0x52   : > { %s146_s24 = sand.u32 7, %s142_s18  ;;  %s138_s2 = scalar_lea.vmem [#allocation5], %s137_s22  ;;  %538 = vmatprep.subr.bf16.mxu0 (%p52_p5), %v1185_v17  ;;  %v1188_v19 = vld [vmem:[#allocation8 + $0x14] ss:$8 sps:$4 sm:$0xff] (%p52_p5)   ;;  %v1190_v20 = vld [vmem:[#allocation8 + $0x10] ss:$8 sps:$4 sm:$0xff] (%p52_p5)  }
  0x53   : > { %v139_v11 = vld [vmem:[%s138_s2] ss:$8 sm:$0x7]  ;;  %s1040_s10 = smul.u32 24, %s143_s23  ;;  %539 = vmatpush1.bf16.msra.mxu0 (%p52_p5), %v1187_v18  ;;  %v1191_v21 = vld [vmem:[#allocation8 + $0x24] ss:$8 sps:$4 sm:$0xff] (%p52_p5)  }
  0x54   : > { %v140_v12 = vadd.f32 %v139_v11, %v128_v10  ;;  %540 = vmatprep.subr.bf16.mxu0 (%p52_p5), %v1188_v19  ;;  %v1193_v22 = vld [vmem:[#allocation8 + $0x20] ss:$8 sps:$4 sm:$0xff] (%p52_p5)   ;;  %v1194_v23 = vld [vmem:[#allocation8 + $0x34] ss:$8 sps:$4 sm:$0xff] (%p52_p5)   ;;  %v1196_v24 = vld [vmem:[#allocation8 + $0x30] ss:$8 sps:$4 sm:$0xff] (%p52_p5)  }
  0x55   : > { %s149_s26 = sadd.s32 %s1040_s10, %s146_s24  ;;  %v1197_v25 = vld [vmem:[#allocation8 + $0x44] ss:$8 sps:$4 sm:$0xff] (%p52_p5)   ;;  %v1199_v26 = vld [vmem:[#allocation8 + $0x40] ss:$8 sps:$4 sm:$0xff] (%p52_p5)   ;;  %v1200_v27 = vld [vmem:[#allocation8 + $0x54] ss:$8 sps:$4 sm:$0xff] (%p52_p5)  }
  0x56   : > { %s150_s29 = scalar_lea.vmem [#allocation5], %s149_s26  ;;  %54 = sbr.rel (!%p52_p5) target bundleno = 52 (0x34), region = 57  ;;  %v1202_v28 = vld [vmem:[#allocation8 + $0x50] ss:$8 sps:$4 sm:$0xff] (%p52_p5)   ;;  %v1203_v29 = vld [vmem:[#allocation8 + $0x64] ss:$8 sps:$4 sm:$0xff] (%p52_p5)  }
  0x57   : > { %v151_v14 = vld [vmem:[%s150_s29] ss:$8 sm:$0x7]  ;;  %541 = vmatpush1.bf16.msra.mxu0 (%p52_p5), %v1190_v20  ;;  %v1206_v33 = vld [vmem:[#allocation8 + $0x74] ss:$8 sps:$4 sm:$0xff] (%p52_p5)   ;;  %s1421_s13 = smov (%p52_p5), [#allocation10]  }
  0x58   : > { %v152_v15 = vadd.f32 %v151_v14, %v140_v12  ;;  %542 = vmatprep.subr.bf16.mxu0 (%p52_p5), %v1191_v21  ;;  %v1205_v32 = vld [vmem:[#allocation8 + $0x60] ss:$8 sps:$4 sm:$0xff] (%p52_p5)   ;;  %v1208_v34 = vld [vmem:[#allocation8 + $0x70] ss:$8 sps:$4 sm:$0xff] (%p52_p5)   ;;  %v1209_v35 = vld [vmem:[#allocation8 + $0x84] ss:$8 sps:$4 sm:$0xff] (%p52_p5)  }
  0x59   :  { %v1211_v36 = vld [vmem:[#allocation8 + $0x80] ss:$8 sps:$4 sm:$0xff] (%p52_p5)   ;;  %v1212_v37 = vld [vmem:[#allocation8 + $0x94] ss:$8 sps:$4 sm:$0xff] (%p52_p5)   ;;  %v1257_v38 = vld [vmem:[#allocation8 + $0x184] ss:$8 sps:$4 sm:$0xff] (%p52_p5)  }
  0x5a   : > { %v153_v16 = vmul.f32 0.125, %v152_v15  ;;  %v1259_v39 = vld [vmem:[#allocation8 + $0x180] ss:$8 sps:$4 sm:$0xff] (%p52_p5)   ;;  %v1214_v40 = vld [vmem:[#allocation8 + $0x90] ss:$8 sps:$4 sm:$0xff] (%p52_p5)   ;;  %797 = vmatprep.subr.bf16.mxu1 (%p52_p5), %v1257_v38  ;;  %v1420_v12 = vmov (%p52_p5), 0  }
  0x5b   :  { %543 = vmatpush1.bf16.msra.mxu0 (%p52_p5), %v1193_v22  ;;  %v1260_v41 = vld [vmem:[#allocation8 + $0x194] ss:$8 sps:$4 sm:$0xff] (%p52_p5)   ;;  %v1215_v42 = vld [vmem:[#allocation8 + $0xa4] ss:$8 sps:$4 sm:$0xff] (%p52_p5)   ;;  %798 = vmatpush1.bf16.msra.mxu1 (%p52_p5), %v1259_v39  ;;  %v1262_v43 = vld [vmem:[#allocation8 + $0x190] ss:$8 sps:$4 sm:$0xff] (%p52_p5)  }
  0x5c   : > { %166 = vst.msk [vmem:[%s165_s5] ss:$8 sm:$0x7] %vm156_vm0, %v153_v16  ;;  %544 = vmatprep.subr.bf16.mxu0 (%p52_p5), %v1194_v23  ;;  %799 = vmatprep.subr.bf16.mxu1 (%p52_p5), %v1260_v41  ;;  %v1263_v44 = vld [vmem:[#allocation8 + $0x1a4] ss:$8 sps:$4 sm:$0xff] (%p52_p5)   ;;  %s990_s14 = sshll.u32 (%p52_p5), %s1421_s13, 4  ;;  %s991_s14 = int_to_ptr.vmem [resolvable:$true] %s990_s14 }
  0x5d   :  { %v1217_v45 = vld [vmem:[#allocation8 + $0xa0] ss:$8 sps:$4 sm:$0xff]   ;;  %v1218_v46 = vld [vmem:[#allocation8 + $0xb4] ss:$8 sps:$4 sm:$0xff]   ;;  %v1220_v49 = vld [vmem:[#allocation8 + $0xb0] ss:$8 sps:$4 sm:$0xff]   ;;  %p1380_p7 = scmp.lt.s32.totalorder %s991_s14, %s991_s14 }
  0x5e   :  { %v1265_v47 = vld [vmem:[#allocation8 + $0x1a0] ss:$8 sps:$4 sm:$0xff]   ;;  %v1266_v48 = vld [vmem:[#allocation8 + $0x1b4] ss:$8 sps:$4 sm:$0xff]   ;;  %v1221_v50 = vld [vmem:[#allocation8 + $0xc4] ss:$8 sps:$4 sm:$0xff]  }
  0x5f   :  { %545 = vmatpush1.bf16.msra.mxu0 %v1196_v24  ;;  %800 = vmatpush1.bf16.msra.mxu1 %v1262_v43  ;;  %v1268_v51 = vld [vmem:[#allocation8 + $0x1b0] ss:$8 sps:$4 sm:$0xff]   ;;  %v1269_v52 = vld [vmem:[#allocation8 + $0x1c4] ss:$8 sps:$4 sm:$0xff]   ;;  %v1223_v53 = vld [vmem:[#allocation8 + $0xc0] ss:$8 sps:$4 sm:$0xff]  }
  0x60   :  { %546 = vmatprep.subr.bf16.mxu0 %v1197_v25  ;;  %801 = vmatprep.subr.bf16.mxu1 %v1263_v44  ;;  %v1224_v54 = vld [vmem:[#allocation8 + $0xd4] ss:$8 sps:$4 sm:$0xff]   ;;  %v1271_v55 = vld [vmem:[#allocation8 + $0x1c0] ss:$8 sps:$4 sm:$0xff]   ;;  %v1226_v57 = vld [vmem:[#allocation8 + $0xd0] ss:$8 sps:$4 sm:$0xff]  }
  0x61   :  { %v1272_v56 = vld [vmem:[#allocation8 + $0x1d4] ss:$8 sps:$4 sm:$0xff]   ;;  %v1227_v58 = vld [vmem:[#allocation8 + $0xe4] ss:$8 sps:$4 sm:$0xff]   ;;  %v1274_v59 = vld [vmem:[#allocation8 + $0x1d0] ss:$8 sps:$4 sm:$0xff]  }
  0x62   :  { %v1275_v60 = vld [vmem:[#allocation8 + $0x1e4] ss:$8 sps:$4 sm:$0xff]   ;;  %v1229_v61 = vld [vmem:[#allocation8 + $0xe0] ss:$8 sps:$4 sm:$0xff]   ;;  %v1230_v62 = vld [vmem:[#allocation8 + $0xf4] ss:$8 sps:$4 sm:$0xff]  }
  0x63   :  { %547 = vmatpush1.bf16.msra.mxu0 %v1199_v26  ;;  %v169_v30 = vld [vmem:[#allocation2 + $0x8] sm:$0xff]  ;;  %802 = vmatpush1.bf16.msra.mxu1 %v1265_v47  ;;  %v1278_v0 = vld [vmem:[#allocation8 + $0x1f4] ss:$8 sps:$4 sm:$0xff]   ;;  %v1232_v1 = vld [vmem:[#allocation8 + $0xf0] ss:$8 sps:$4 sm:$0xff]   ;;  %s1375_s6 = scalar_lea.vmem %s991_s14, 128 }
  0x64   :  { %548 = vmatprep.subr.bf16.mxu0 %v1200_v27  ;;  %v172_v31 = vpack.c.bf16 %v169_v30, %v169_v30  ;;  %803 = vmatprep.subr.bf16.mxu1 %v1266_v48  ;;  %v1277_v63 = vld [vmem:[#allocation8 + $0x1e0] ss:$8 sps:$4 sm:$0xff]   ;;  %v1235_v3 = vld [vmem:[#allocation8 + $0x104] ss:$8 sps:$4 sm:$0xff]   ;;  %v1280_v4 = vld [vmem:[#allocation8 + $0x1f0] ss:$8 sps:$4 sm:$0xff]   ;;  %p1376_p6 = scmp.ne.s32.totalorder %s991_s14, %s1375_s6  ;;  %p1381_p8 = scmp.lt.s32.totalorder %s1375_s6, %s1375_s6 }
  0x65   :  { %v168_v2 = vld [vmem:[#allocation2] sm:$0xff]  ;;  %v1238_v8 = vld [vmem:[#allocation8 + $0x114] ss:$8 sps:$4 sm:$0xff]   ;;  %v1236_v11 = vld [vmem:[#allocation8 + $0x110] ss:$8 sps:$4 sm:$0xff]  }
  0x66   :  { %570 = vmatprep.mubr.bf16.mxu0 %v172_v31  ;;  %v1281_v5 = vld [vmem:[#allocation8 + $0x204] ss:$8 sps:$4 sm:$0xff]   ;;  %v1233_v6 = vld [vmem:[#allocation8 + $0x100] ss:$8 sps:$4 sm:$0xff]   ;;  %v171_v7 = vpack.c.bf16 %v168_v2, %v168_v2  ;;  %v1284_v10 = vld [vmem:[#allocation8 + $0x214] ss:$8 sps:$4 sm:$0xff]   ;;  %p1382_p9 = por %p1381_p8, %p1380_p7 }
  0x67   :  { %549 = vmatpush1.bf16.msra.mxu0 %v1202_v28  ;;  %804 = vmatpush1.bf16.msra.mxu1 %v1268_v51  ;;  %v1283_v9 = vld [vmem:[#allocation8 + $0x200] ss:$8 sps:$4 sm:$0xff]   ;;  %v1241_v14 = vld [vmem:[#allocation8 + $0x124] ss:$8 sps:$4 sm:$0xff]   ;;  %v1286_v15 = vld [vmem:[#allocation8 + $0x210] ss:$8 sps:$4 sm:$0xff]  }
  0x68   :  { %550 = vmatprep.subr.bf16.mxu0 %v1203_v29  ;;  %805 = vmatprep.subr.bf16.mxu1 %v1269_v52  ;;  %v1287_v16 = vld [vmem:[#allocation8 + $0x224] ss:$8 sps:$4 sm:$0xff]   ;;  %v1239_v17 = vld [vmem:[#allocation8 + $0x120] ss:$8 sps:$4 sm:$0xff]   ;;  %v1244_v18 = vld [vmem:[#allocation8 + $0x134] ss:$8 sps:$4 sm:$0xff]   ;;  %p1383_p10 = pnand %p1382_p9, %p1376_p6 }
  0x69   :  { %v1289_v19 = vld [vmem:[#allocation8 + $0x220] ss:$8 sps:$4 sm:$0xff]   ;;  %v1290_v20 = vld [vmem:[#allocation8 + $0x234] ss:$8 sps:$4 sm:$0xff]   ;;  %v1242_v21 = vld [vmem:[#allocation8 + $0x130] ss:$8 sps:$4 sm:$0xff]  }
  0x6a   :  { %v1247_v22 = vld [vmem:[#allocation8 + $0x144] ss:$8 sps:$4 sm:$0xff]   ;;  %v1292_v23 = vld [vmem:[#allocation8 + $0x230] ss:$8 sps:$4 sm:$0xff]   ;;  %v1245_v25 = vld [vmem:[#allocation8 + $0x140] ss:$8 sps:$4 sm:$0xff]  }
  0x6b   :  { %551 = vmatpush1.bf16.msra.mxu0 %v1205_v32  ;;  %806 = vmatpush1.bf16.msra.mxu1 %v1271_v55  ;;  %v1293_v24 = vld [vmem:[#allocation8 + $0x244] ss:$8 sps:$4 sm:$0xff]   ;;  %v1250_v26 = vld [vmem:[#allocation8 + $0x154] ss:$8 sps:$4 sm:$0xff]   ;;  %v1295_v27 = vld [vmem:[#allocation8 + $0x240] ss:$8 sps:$4 sm:$0xff]  }
  0x6c   :  { %552 = vmatprep.subr.bf16.mxu0 %v1206_v33  ;;  %807 = vmatprep.subr.bf16.mxu1 %v1272_v56  ;;  %v1296_v28 = vld [vmem:[#allocation8 + $0x254] ss:$8 sps:$4 sm:$0xff]   ;;  %v1248_v29 = vld [vmem:[#allocation8 + $0x150] ss:$8 sps:$4 sm:$0xff]   ;;  %v1253_v30 = vld [vmem:[#allocation8 + $0x164] ss:$8 sps:$4 sm:$0xff]  }
  0x6d   :  { %v1298_v31 = vld [vmem:[#allocation8 + $0x250] ss:$8 sps:$4 sm:$0xff]   ;;  %v1251_v32 = vld [vmem:[#allocation8 + $0x160] ss:$8 sps:$4 sm:$0xff]   ;;  %v1256_v33 = vld [vmem:[#allocation8 + $0x174] ss:$8 sps:$4 sm:$0xff]  }
  0x6e   :  { %v1301_v38 = vld [vmem:[#allocation8 + $0x260] ss:$8 sps:$4 sm:$0xff]   ;;  %v1302_v39 = vld [vmem:[#allocation8 + $0x274] ss:$8 sps:$4 sm:$0xff]   ;;  %v1315_v2 = vld [vmem:[#allocation8 + $0x350] ss:$8 sps:$4 sm:$0xff]  }
  0x6f   :  { %553 = vmatpush1.bf16.msra.mxu0 %v1208_v34  ;;  %808 = vmatpush1.bf16.msra.mxu1 %v1274_v59  ;;  %v1254_v34 = vld [vmem:[#allocation8 + $0x170] ss:$8 sps:$4 sm:$0xff]   ;;  %v1305_v41 = vld [vmem:[#allocation8 + $0x300] ss:$8 sps:$4 sm:$0xff]  }
  0x70   :  { %554 = vmatprep.subr.bf16.mxu0 %v1209_v35  ;;  %809 = vmatprep.subr.bf16.mxu1 %v1275_v60  ;;  %v170_v35 = vld [vmem:[#allocation2 + $0x10] sm:$0xff]  ;;  %v286_v44 = vld [vmem:[%s1540_s3] ss:$4 sm:$0x3]  ;;  %v1309_v60 = vld [vmem:[#allocation8 + $0x320] ss:$8 sps:$4 sm:$0xff]  }
  0x71   :  { %v1308_v59 = vld [vmem:[#allocation8 + $0x290] ss:$8 sps:$4 sm:$0xff]  }
  0x73   :  { %555 = vmatpush1.bf16.msra.mxu0 %v1211_v36  ;;  %810 = vmatpush1.bf16.msra.mxu1 %v1277_v63  ;;  %v173_v36 = vpack.c.bf16 %v170_v35, %v170_v35  ;;  %v1312_v63 = vld [vmem:[#allocation8 + $0x2b0] ss:$8 sps:$4 sm:$0xff]  }
  0x74   :  { %556 = vmatprep.subr.bf16.mxu0 %v1212_v37  ;;  %811 = vmatprep.subr.bf16.mxu1 %v1278_v0  ;;  %v1299_v37 = vld [vmem:[#allocation8 + $0x264] ss:$8 sps:$4 sm:$0xff]   ;;  %v1313_v0 = vld [vmem:[#allocation8 + $0x340] ss:$8 sps:$4 sm:$0xff]  }
  0x77   :  { %557 = vmatpush1.bf16.msra.mxu0 %v1214_v40  ;;  %812 = vmatpush1.bf16.msra.mxu1 %v1280_v4  ;;  %v1304_v40 = vld [vmem:[#allocation8 + $0x270] ss:$8 sps:$4 sm:$0xff]   ;;  %v1317_v4 = vld [vmem:[#allocation8 + $0x360] ss:$8 sps:$4 sm:$0xff]  }
  0x78   :  { %558 = vmatprep.subr.bf16.mxu0 %v1215_v42  ;;  %813 = vmatprep.subr.bf16.mxu1 %v1281_v5  ;;  %v289_v42 = vshrl.u32 %v154_v13, 7  ;;  %v1307_v13 = vld [vmem:[#allocation8 + $0x310] ss:$8 sps:$4 sm:$0xff]   ;;  %v1318_v5 = vld [vmem:[#allocation8 + $0x2e0] ss:$8 sps:$4 sm:$0xff]  }
  0x7a   :  { %v290_v43 = vsub.s32 0, %v289_v42 }
  0x7b   :  { %559 = vmatpush1.bf16.msra.mxu0 %v1217_v45  ;;  %814 = vmatpush1.bf16.msra.mxu1 %v1283_v9  ;;  %v294_v45 = vsub.s32 1, %v289_v42 }
  0x7c   :  { %560 = vmatprep.subr.bf16.mxu0 %v1218_v46  ;;  %815 = vmatprep.subr.bf16.mxu1 %v1284_v10  ;;  %v291_v46 = vrot.slane %v286_v44, %v290_v43 }
  0x7d   :  { %v295_v47 = vrot.slane %v286_v44, %v294_v45 }
  0x7f   :  { %561 = vmatpush1.bf16.msra.mxu0 %v1220_v49  ;;  %816 = vmatpush1.bf16.msra.mxu1 %v1286_v15 }
  0x80   :  { %562 = vmatprep.subr.bf16.mxu0 %v1221_v50  ;;  %817 = vmatprep.subr.bf16.mxu1 %v1287_v16 }
  0x83   :  { %563 = vmatpush1.bf16.msra.mxu0 %v1223_v53  ;;  %818 = vmatpush1.bf16.msra.mxu1 %v1289_v19 }
  0x84   :  { %564 = vmatprep.subr.bf16.mxu0 %v1224_v54  ;;  %819 = vmatprep.subr.bf16.mxu1 %v1290_v20 }
  0x87   :  { %565 = vmatpush1.bf16.msra.mxu0 %v1226_v57  ;;  %820 = vmatpush1.bf16.msra.mxu1 %v1292_v23  ;;  %v1306_v57 = vld [vmem:[#allocation8 + $0x280] ss:$8 sps:$4 sm:$0xff]  }
  0x88   :  { %566 = vmatprep.subr.bf16.mxu0 %v1227_v58  ;;  %821 = vmatprep.subr.bf16.mxu1 %v1293_v24  ;;  %v1123_v24 = vld [vmem:[%s1540_s3 + $0x2] ss:$0 sm:$0xff] }
  0x8b   :  { %567 = vmatpush1.bf16.msra.mxu0 %v1229_v61  ;;  %822 = vmatpush1.bf16.msra.mxu1 %v1295_v27  ;;  %v1310_v61 = vld [vmem:[#allocation8 + $0x2a0] ss:$8 sps:$4 sm:$0xff]  }
  0x8c   :  { %568 = vmatprep.subr.bf16.mxu0 %v1230_v62  ;;  %823 = vmatprep.subr.bf16.mxu1 %v1296_v28  ;;  %v1311_v62 = vld [vmem:[#allocation8 + $0x330] ss:$8 sps:$4 sm:$0xff]  }
  0x8f   :  { %569 = vmatpush1.bf16.msra.mxu0 %v1232_v1  ;;  %824 = vmatpush1.bf16.msra.mxu1 %v1298_v31  ;;  %v1314_v1 = vld [vmem:[#allocation8 + $0x2c0] ss:$8 sps:$4 sm:$0xff]  }
  0x90   :  { %579 = vmatprep.subr.bf16.mxu0 %v1235_v3  ;;  %825 = vmatprep.subr.bf16.mxu1 %v1299_v37  ;;  %v1316_v3 = vld [vmem:[#allocation8 + $0x2d0] ss:$8 sps:$4 sm:$0xff]  }
  0x92   :  { %571 = vmatmul.mubr.bf16.vlgmr.msra.gmra.mrb[0].mxu0 %v171_v7  ;;  %v1320_v7 = vld [vmem:[#allocation8 + $0x2f0] ss:$8 sps:$4 sm:$0xff]  }
  0x93   :  { %580 = vmatpush1.bf16.msra.mxu0 %v1233_v6  ;;  %611 = vmatprep.mubr.bf16.mxu0 %v1420_v12  ;;  %v1319_v6 = vld [vmem:[#allocation8 + $0x370] ss:$8 sps:$4 sm:$0xff]  }
  0x94   :  { %581 = vmatprep.subr.bf16.mxu0 %v1238_v8  ;;  %826 = vmatpush1.bf16.msra.mxu1 %v1301_v38  ;;  %v1090_v8 = vld [vmem:[%s1540_s3 + $0x1] ss:$4 sm:$0x3] }
  0x95   :  { %827 = vmatprep.subr.bf16.mxu1 %v1302_v39  ;;  %v630_v9 = vrot.slane %v1090_v8, %v290_v43  ;;  %v634_v10 = vrot.slane %v1090_v8, %v294_v45 }
  0x97   :  { %582 = vmatpush1.bf16.msra.mxu0 %v1236_v11 }
  0x98   :  { %583 = vmatprep.subr.bf16.mxu0 %v1241_v14  ;;  %828 = vmatpush1.bf16.msra.mxu1 %v1304_v40 }
  0x99   :  { %1140 = vmatprep.subr.bf16.mxu1 %v1305_v41 }
  0x9b   :  { %584 = vmatpush1.bf16.msra.mxu0 %v1239_v17 }
  0x9c   :  { %585 = vmatprep.subr.bf16.mxu0 %v1244_v18 }
  0x9f   :  { %586 = vmatpush1.bf16.msra.mxu0 %v1242_v21 }
  0xa0   :  { %587 = vmatprep.subr.bf16.mxu0 %v1247_v22 }
  0xa3   :  { %588 = vmatpush1.bf16.msra.mxu0 %v1245_v25 }
  0xa4   :  { %589 = vmatprep.subr.bf16.mxu0 %v1250_v26 }
  0xa7   :  { %590 = vmatpush1.bf16.msra.mxu0 %v1248_v29 }
  0xa8   :  { %591 = vmatprep.subr.bf16.mxu0 %v1253_v30 }
  0xab   :  { %592 = vmatpush1.bf16.msra.mxu0 %v1251_v32 }
  0xac   :  { %593 = vmatprep.subr.bf16.mxu0 %v1256_v33 }
  0xaf   :  { %594 = vmatpush1.bf16.msra.mxu0 %v1254_v34 }
  0xb2   :  { %612 = vmatmul.mubr.bf16.vlgmr.msra.gmra.mrb[0].mxu0 %v173_v36 }
 0x185   :  { %v613_v48 = vpop.f32.mrb[0].mxu0 }
 0x186   :  { %v1162_v49 = vadd.f32 %v613_v48, %v291_v46  ;;  %v615_v50 = vpop.f32.mrb[1].mxu0 }
 0x187   :  { %v1163_v51 = vadd.f32 %v615_v50, %v295_v47  ;;  %v617_v52 = vpop.f32.mrb[2].mxu0 }
 0x188   :  { %v620_v53 = vmax.f32 %v1162_v49, 0.0  ;;  %v618_v54 = vpop.f32.mrb[3].mxu0 }
 0x189   :  { %v621_v55 = vmax.f32 %v1163_v51, 0.0 }
 0x18a   :  { %v622_v58 = vpack.c.bf16 %v620_v53, %v620_v53 }
 0x18b   :  { %v623_v56 = vpack.c.bf16 %v621_v55, %v621_v55 }
 0x18d   :  { %829 = vmatprep.mubr.bf16.mxu1 %v623_v56 }
 0x18e   :  { %830 = vmatmul.mubr.bf16.vlgmr.msra.gmra.mrb[0].mxu1 %v622_v58 }
 0x18f   :  { %1141 = vmatpush3.bf16.msra.mxu1 %v1306_v57 }
 0x190   :  { %1142 = vmatprep.subr.bf16.mxu1 %v1307_v13 }
 0x193   :  { %1143 = vmatpush3.bf16.msra.mxu1 %v1308_v59 }
 0x194   :  { %1144 = vmatprep.subr.bf16.mxu1 %v1309_v60 }
 0x197   :  { %1145 = vmatpush3.bf16.msra.mxu1 %v1310_v61 }
 0x198   :  { %1146 = vmatprep.subr.bf16.mxu1 %v1311_v62 }
 0x19b   :  { %1147 = vmatpush3.bf16.msra.mxu1 %v1312_v63 }
 0x19c   :  { %1148 = vmatprep.subr.bf16.mxu1 %v1313_v0 }
 0x19f   :  { %1149 = vmatpush3.bf16.msra.mxu1 %v1314_v1 }
 0x1a0   :  { %1150 = vmatprep.subr.bf16.mxu1 %v1315_v2 }
 0x1a3   :  { %1151 = vmatpush3.bf16.msra.mxu1 %v1316_v3 }
 0x1a4   :  { %1152 = vmatprep.subr.bf16.mxu1 %v1317_v4 }
 0x1a7   :  { %1153 = vmatpush3.bf16.msra.mxu1 %v1318_v5 }
 0x1a8   :  { %1154 = vmatprep.subr.bf16.mxu1 %v1319_v6 }
 0x1ab   :  { %1155 = vmatpush3.bf16.msra.mxu1 %v1320_v7 }
 0x261   :  { %v831_v11 = vpop.f32.mrb[0].mxu1 }
 0x262   :  { %v832_v12 = vadd.f32 %v831_v11, %v630_v9  ;;  %v833_v14 = vpop.f32.mrb[1].mxu1 }
 0x263   :  { %v834_v15 = vadd.f32 %v833_v14, %v634_v10  ;;  %v835_v16 = vpop.f32.mrb[2].mxu1 }
 0x264   :  { %v838_v17 = vmax.f32 %v832_v12, 0.0  ;;  %v836_v18 = vpop.f32.mrb[3].mxu1 }
 0x265   :  { %v839_v19 = vmax.f32 %v834_v15, 0.0 }
 0x266   :  { %v840_v21 = vpack.c.bf16 %v838_v17, %v838_v17 }
 0x267   :  { %v841_v20 = vpack.c.bf16 %v839_v19, %v839_v19 }
 0x269   :  { %975 = vmatprep.mubr.bf16.mxu1 %v841_v20 }
 0x26a   :  { %976 = vmatmul.mubr.bf16.vlgmr.msra.gmra.mrb[4].mxu1 %v840_v21 }
 0x33d   :  { %v1156_v22 = vpop.f32.mrb[4].mxu1 }
 0x33e   :  { %v1157_v23 = vpop.f32.mrb[5].mxu1 }
 0x33f   :  { %v1158_v25 = vadd.f32 %v1157_v23, %v1156_v22  ;;  %v1159_v26 = vpop.f32.mrb[6].mxu1 }
 0x340   :  { %v1160_v27 = vpop.f32.mrb[7].mxu1 }
 0x341   :  { %v978_v28 = vadd.f32 %v1158_v25, %v1123_v24 }
 0x343   :  { %983 = vst [vmem:[#allocation10] sm:$0xff] %v978_v28 }
 0x344   :  { %1386 = shalt.err (!%p1383_p10)
}
 0x345   :  { %s1387_s17 = scalar_lea.hbm %s1541_s4, 128 }
 0x346   :  { %p1388_p11 = scmp.ne.s32.totalorder %s1541_s4, %s1387_s17  ;;  %p1391_p12 = scmp.lt.u32.totalorder %s1387_s17, %s1541_s4 }
 0x348   :  { %p1393_p13 = pnand %p1391_p12, %p1388_p11 }
 0x34a   :  { %1396 = shalt.err (!%p1393_p13)
}
 0x34b   :  { %993 = dma.vmem_to_hbm [thread:$0]  %s991_s14, 128, %s1541_s4, [#allocation7]  }
 0x34c   :  { %1407 = dma.done.wait [#allocation7], 128  }
 0x34d   :  { %1408 = vsyncadd [#allocation7], 4294967168 }
 0x34e   :  { %997 = vsyncpa [#allocation6], 1 }
 0x34f   :  { %998 = vsyncpa [#allocation9], 1 }
 0x350   :  { %999 = vsyncpa [#allocation7], 1 }

</bundles_post_ra>
